<compile_context>
chip_gen: v5e
topology: v5e:2x2
jax: 0.10.0
libtpu: 0.0.40
codegen_flags: <defaults>
</compile_context>

<pallas_src>
import jax
import jax.numpy as jnp
from jax import lax
from jax.experimental import pallas as pl
from jax.experimental.pallas import tpu as pltpu

_EPS = 1e-5
_HI = lax.Precision.HIGHEST


def _sigmoid(v):
    return 1.0 / (1.0 + jnp.exp(-v))


def _ceil_to(a, m):
    return -(-a // m) * m


def _vmem_capacity_bytes():
    try:
        info = pltpu.get_tpu_info()
        cap = getattr(info, "vmem_capacity_bytes", None)
        if cap:
            return int(cap)
    except Exception:
        pass
    return 64 << 20  # conservative default: v7x per-TensorCore VMEM


def _make_kernel(bb, B, C, H, W, mask_rows):
    """One grid step processes bb images stored lane-dense as (bb*C, HWp)."""
    R = bb * C

    def kernel(x_ref, pool_ref, eh_ref, ew_ref, w1_ref, b1_ref,
               wh_ref, bh_ref, ww_ref, bw_ref, o_ref):
        x = x_ref[...].astype(jnp.float32)                       # (R, HWp)
        if mask_rows:
            # Zero rows past B*C (ragged last block): keeps garbage out of the
            # block-diagonal matmuls and the (discarded) padded outputs finite.
            start = pl.program_id(0) * R
            rid = start + lax.broadcasted_iota(jnp.int32, (R, 1), 0)
            x = jnp.where(rid < B * C, x, 0.0)

        # Coordinate pooling for all bb images in ONE matmul:
        #   y = [mean_W(x) | mean_H(x)]  -> (R, H+W).  HIGHEST: long reduction.
        y = jnp.dot(x, pool_ref[...],
                    preferred_element_type=jnp.float32, precision=_HI)

        # conv1 (1x1, BN folded) + ReLU on the fused pooled tensor, batched
        # across images via block-diagonal weights (tiny matmuls).
        z = jnp.dot(w1_ref[...], y,
                    preferred_element_type=jnp.float32, precision=_HI) + b1_ref[...]
        z = jnp.maximum(z, 0.0)                                  # (bb*mid, H+W)

        ah = _sigmoid(jnp.dot(wh_ref[...], z[:, :H],
                              preferred_element_type=jnp.float32,
                              precision=_HI) + bh_ref[...])      # (R, H)
        aw = _sigmoid(jnp.dot(ww_ref[...], z[:, H:],
                              preferred_element_type=jnp.float32,
                              precision=_HI) + bw_ref[...])      # (R, W)

        # Expand gates back to lane-dense (R, HWp) with a two-term bf16 split
        # against bf16 one-hot matrices: exact to ~4e-6, 2 bf16 MXU passes
        # (vs 6 f32-HIGHEST passes), no relayout of the big tile.
        def expand(a, onehot):
            hi = a.astype(jnp.bfloat16)
            lo = (a - hi.astype(jnp.float32)).astype(jnp.bfloat16)
            return (jnp.dot(hi, onehot, preferred_element_type=jnp.float32)
                    + jnp.dot(lo, onehot, preferred_element_type=jnp.float32))

        gate = expand(ah, eh_ref[...]) * expand(aw, ew_ref[...])  # (R, HWp)
        o_ref[...] = (x * gate).astype(o_ref.dtype)

    return kernel


def coordinate_attention(x, params):
    """x: (B, C, H, W).  params: BN-folded kernel parameters."""
    B, C, H, W = x.shape
    HW = H * W
    HWp = _ceil_to(HW, 128)          # lane-dense output stores on all chips
    w1f, b1f, wh, bh, ww, bw = params
    mid = w1f.shape[0]
    itemsize = jnp.dtype(x.dtype).itemsize

    # ---- constant pooling / one-hot expansion matrices over HWp lanes ----
    lane = jnp.arange(HWp, dtype=jnp.int32)
    valid = lane < HW
    h_of_l = lane // W
    w_of_l = lane % W
    ph = ((h_of_l[:, None] == jnp.arange(H, dtype=jnp.int32)[None, :])
          & valid[:, None]).astype(jnp.float32) / float(W)        # (HWp, H)
    pw = ((w_of_l[:, None] == jnp.arange(W, dtype=jnp.int32)[None, :])
          & valid[:, None]).astype(jnp.float32) / float(H)        # (HWp, W)
    pool = jnp.concatenate([ph, pw], axis=1)                      # (HWp, H+W)
    eh = ((jnp.arange(H, dtype=jnp.int32)[:, None] == h_of_l[None, :])
          & valid[None, :]).astype(jnp.bfloat16)                  # (H, HWp) 0/1
    ew = ((jnp.arange(W, dtype=jnp.int32)[:, None] == w_of_l[None, :])
          & valid[None, :]).astype(jnp.bfloat16)                  # (W, HWp) 0/1

    # ---- chip-aware bb selection & VMEM accounting ----
    def padded2d(shape, isize):
        r, c = shape
        return _ceil_to(r, 8) * _ceil_to(c, 128) * isize

    def needed_bytes(bb):
        R = bb * C
        io = 4 * padded2d((R, HWp), itemsize)          # x + out, double-buffered
        inter = 4 * padded2d((R, HWp), 4)              # f32 x, 2 expansions, gate
        const = (padded2d((HWp, H + W), 4)
                 + padded2d((H, HWp), 2) + padded2d((W, HWp), 2)
                 + padded2d((bb * mid, R), 4) + 2 * padded2d((R, bb * mid), 4)
                 + 3 * padded2d((max(R, bb * mid), 1), 4))
        return io + inter + 2 * const + (2 << 20)

    cap = _vmem_capacity_bytes()                        # 64 MiB v7x, 128 MiB v5e/v6e
    budget = min(int(0.45 * cap), 64 << 20)
    # Block sublane dim must be a multiple of 8 or equal the full dim (B*C).
    legal = [b_ for b_ in range(1, B + 1) if ((b_ * C) % 8 == 0) or (b_ == B)]
    feasible = [b_ for b_ in legal if needed_bytes(b_) <= budget]
    if not feasible:
        feasible = [legal[0]]
    steps_target = min(B, 4)          # >= 2 steps per TensorCore on v7x when possible
    pref = [b_ for b_ in feasible if -(-B // b_) >= steps_target]
    bb = max(pref) if pref else min(feasible)
    grid = pl.cdiv(B, bb)
    mask_rows = (B % bb) != 0
    R = bb * C

    vmem_limit = int(min(max(needed_bytes(bb), 24 << 20), int(0.85 * cap)))

    # ---- block-diagonal weights so the pooled-domain chain is batched ----
    eye = jnp.eye(bb, dtype=jnp.float32)
    w1b = jnp.kron(eye, w1f)           # (bb*mid, bb*C)
    whb = jnp.kron(eye, wh)            # (bb*C, bb*mid)
    wwb = jnp.kron(eye, ww)
    b1b = jnp.tile(b1f, (bb, 1))       # (bb*mid, 1)
    bhb = jnp.tile(bh, (bb, 1))        # (bb*C, 1)
    bwb = jnp.tile(bw, (bb, 1))

    # Lane-dense view of x: (B*C, HWp); pad lanes with zeros if HW % 128 != 0.
    x2 = x.reshape(B * C, HW)
    if HWp != HW:
        x2 = jnp.pad(x2, ((0, 0), (0, HWp - HW)))

    consts = (pool, eh, ew, w1b, b1b, whb, bhb, wwb, bwb)
    const_specs = [pl.BlockSpec(a.shape, lambda b: (0, 0)) for a in consts]

    kernel = _make_kernel(bb, B, C, H, W, mask_rows)
    out2 = pl.pallas_call(
        kernel,
        out_shape=jax.ShapeDtypeStruct((B * C, HWp), x.dtype),
        grid_spec=pltpu.PrefetchScalarGridSpec(
            num_scalar_prefetch=0,
            grid=(grid,),
            in_specs=[pl.BlockSpec((R, HWp), lambda b: (b, 0))] + const_specs,
            out_specs=pl.BlockSpec((R, HWp), lambda b: (b, 0)),
        ),
        compiler_params=pltpu.CompilerParams(
            dimension_semantics=("parallel",),
            vmem_limit_bytes=vmem_limit,
        ),
    )(x2, *consts)

    return out2[:, :HW].reshape(B, C, H, W)


def init_params(key, in_channels, out_channels, reduction=32):
    """Deterministic synthetic init (shapes match the PyTorch module)."""
    mid = max(8, in_channels // reduction)
    k1, k2, k3, k4, k5, k6 = jax.random.split(key, 6)
    w1 = jax.random.normal(k1, (mid, in_channels), jnp.float32) * 0.1
    b1 = jax.random.normal(k2, (mid,), jnp.float32) * 0.1
    wh = jax.random.normal(k3, (out_channels, mid), jnp.float32) * 0.1
    bh = jax.random.normal(k4, (out_channels,), jnp.float32) * 0.1
    ww = jax.random.normal(k5, (out_channels, mid), jnp.float32) * 0.1
    bw = jax.random.normal(k6, (out_channels,), jnp.float32) * 0.1
    # BatchNorm2d default params / running stats.
    gamma = jnp.ones((mid,), jnp.float32)
    beta = jnp.zeros((mid,), jnp.float32)
    rmean = jnp.zeros((mid,), jnp.float32)
    rvar = jnp.ones((mid,), jnp.float32)
    # Fold eval-mode BN into conv1.
    s = gamma / jnp.sqrt(rvar + _EPS)
    w1f = w1 * s[:, None]
    b1f = (b1 - rmean) * s + beta
    folded = (w1f, b1f[:, None], wh, bh[:, None], ww, bw[:, None])
    raw = (w1, b1, gamma, beta, rmean, rvar, wh, bh, ww, bw)
    return folded, raw


def reference(x, raw):
    """Pure-JAX mirror of the (intended) PyTorch forward, for verification."""
    w1, b1, gamma, beta, rmean, rvar, wh, bh, ww, bw = raw
    B, C, H, W = x.shape
    xh = jnp.mean(x, axis=3)                              # (B, C, H)
    xw = jnp.mean(x, axis=2)                              # (B, C, W)
    y = jnp.concatenate([xh, xw], axis=2)                 # (B, C, H+W)
    y = jnp.einsum("mc,bcl->bml", w1, y, precision=_HI) + b1[None, :, None]
    y = (y - rmean[None, :, None]) * (gamma / jnp.sqrt(rvar + _EPS))[None, :, None] \
        + beta[None, :, None]
    y = jnp.maximum(y, 0.0)
    zh, zw = y[:, :, :H], y[:, :, H:]
    ah = jax.nn.sigmoid(jnp.einsum("om,bml->bol", wh, zh, precision=_HI)
                        + bh[None, :, None])
    aw = jax.nn.sigmoid(jnp.einsum("om,bml->bol", ww, zw, precision=_HI)
                        + bw[None, :, None])
    return x * ah[:, :, :, None] * aw[:, :, None, :]


if __name__ == "__main__":
    key = jax.random.PRNGKey(0)
    kx, kp = jax.random.split(key)
    B, C, H, W = 2, 4, 16, 16                 # in_channels = out_channels = 4
    x = jax.random.normal(kx, (B, C, H, W), jnp.float32)
    folded, raw = init_params(kp, in_channels=C, out_channels=C)

    out = coordinate_attention(x, folded)
    out = jax.block_until_ready(out)

    ref = reference(x, raw)
    assert out.shape == (B, C, H, W)
    max_err = float(jnp.max(jnp.abs(out - ref)))
    assert jnp.allclose(out, ref, atol=1e-4, rtol=1e-4), f"max_err={max_err}"
    print("KERNEL_OK")
</pallas_src>

<mosaic_0001>
module attributes {stable_mosaic.version = 11 : i64} {
  func.func @kernel(%arg0: i32, %arg1: memref<8x256xf32, #tpu.memory_space<vmem>>, %arg2: memref<256x32xf32, #tpu.memory_space<vmem>>, %arg3: memref<16x256xbf16, #tpu.memory_space<vmem>>, %arg4: memref<16x256xbf16, #tpu.memory_space<vmem>>, %arg5: memref<16x8xf32, #tpu.memory_space<vmem>>, %arg6: memref<16x1xf32, #tpu.memory_space<vmem>>, %arg7: memref<8x16xf32, #tpu.memory_space<vmem>>, %arg8: memref<8x1xf32, #tpu.memory_space<vmem>>, %arg9: memref<8x16xf32, #tpu.memory_space<vmem>>, %arg10: memref<8x1xf32, #tpu.memory_space<vmem>>, %arg11: memref<8x256xf32, #tpu.memory_space<vmem>>) attributes {dimension_semantics = [#tpu.dimension_semantics<parallel>], iteration_bounds = array<i64: 1>, scalar_prefetch = 0 : i64, scratch_operands = 0 : i64, tpu.core_type = #tpu.core_type<tc>, window_params = [{transform_indices = @transform_0, window_bounds = array<i64: 8, 256>}, {pipeline_mode = #tpu.pipeline_mode<synchronous>, transform_indices = @transform_1, window_bounds = array<i64: 256, 32>}, {pipeline_mode = #tpu.pipeline_mode<synchronous>, transform_indices = @transform_2, window_bounds = array<i64: 16, 256>}, {pipeline_mode = #tpu.pipeline_mode<synchronous>, transform_indices = @transform_3, window_bounds = array<i64: 16, 256>}, {pipeline_mode = #tpu.pipeline_mode<synchronous>, transform_indices = @transform_4, window_bounds = array<i64: 16, 8>}, {pipeline_mode = #tpu.pipeline_mode<synchronous>, transform_indices = @transform_5, window_bounds = array<i64: 16, 1>}, {pipeline_mode = #tpu.pipeline_mode<synchronous>, transform_indices = @transform_6, window_bounds = array<i64: 8, 16>}, {pipeline_mode = #tpu.pipeline_mode<synchronous>, transform_indices = @transform_7, window_bounds = array<i64: 8, 1>}, {pipeline_mode = #tpu.pipeline_mode<synchronous>, transform_indices = @transform_8, window_bounds = array<i64: 8, 16>}, {pipeline_mode = #tpu.pipeline_mode<synchronous>, transform_indices = @transform_9, window_bounds = array<i64: 8, 1>}, {transform_indices = @transform_10, window_bounds = array<i64: 8, 256>}]} {
    %c0 = arith.constant 0 : index
    %c0_0 = arith.constant 0 : index
    %0 = vector.load %arg1[%c0, %c0_0] : memref<8x256xf32, #tpu.memory_space<vmem>>, vector<8x256xf32>
    %c0_1 = arith.constant 0 : index
    %c0_2 = arith.constant 0 : index
    %1 = vector.load %arg2[%c0_1, %c0_2] : memref<256x32xf32, #tpu.memory_space<vmem>>, vector<256x32xf32>
    %cst = arith.constant dense<0.000000e+00> : vector<8x32xf32>
    %2 = tpu.matmul %0, %1, %cst {dimension_numbers = #tpu.dot_dimension_numbers<[1], [0], [0], [1], [0, 0, 1, 1], [], []>, precision = #tpu.contract_precision<fp32>} : vector<8x256xf32>, vector<256x32xf32>, vector<8x32xf32> -> vector<8x32xf32>
    %c0_3 = arith.constant 0 : index
    %c0_4 = arith.constant 0 : index
    %3 = vector.load %arg5[%c0_3, %c0_4] : memref<16x8xf32, #tpu.memory_space<vmem>>, vector<16x8xf32>
    %cst_5 = arith.constant dense<0.000000e+00> : vector<16x32xf32>
    %4 = tpu.matmul %3, %2, %cst_5 {dimension_numbers = #tpu.dot_dimension_numbers<[1], [0], [0], [1], [0, 0, 1, 1], [], []>, precision = #tpu.contract_precision<fp32>} : vector<16x8xf32>, vector<8x32xf32>, vector<16x32xf32> -> vector<16x32xf32>
    %c0_6 = arith.constant 0 : index
    %c0_7 = arith.constant 0 : index
    %5 = vector.load %arg6[%c0_6, %c0_7] : memref<16x1xf32, #tpu.memory_space<vmem>>, vector<16x1xf32>
    %6 = vector.broadcast %5 : vector<16x1xf32> to vector<16x32xf32>
    %7 = arith.addf %4, %6 : vector<16x32xf32>
    %cst_8 = arith.constant 0.000000e+00 : f32
    %8 = vector.broadcast %cst_8 : f32 to vector<16x32xf32>
    %9 = arith.maximumf %7, %8 : vector<16x32xf32>
    %c0_9 = arith.constant 0 : index
    %c0_10 = arith.constant 0 : index
    %10 = vector.load %arg7[%c0_9, %c0_10] : memref<8x16xf32, #tpu.memory_space<vmem>>, vector<8x16xf32>
    %11 = vector.extract_strided_slice %9 {offsets = [0, 0], sizes = [16, 16], strides = [1, 1]} : vector<16x32xf32> to vector<16x16xf32>
    %cst_11 = arith.constant dense<0.000000e+00> : vector<8x16xf32>
    %12 = tpu.matmul %10, %11, %cst_11 {dimension_numbers = #tpu.dot_dimension_numbers<[1], [0], [0], [1], [0, 0, 1, 1], [], []>, precision = #tpu.contract_precision<fp32>} : vector<8x16xf32>, vector<16x16xf32>, vector<8x16xf32> -> vector<8x16xf32>
    %c0_12 = arith.constant 0 : index
    %c0_13 = arith.constant 0 : index
    %13 = vector.load %arg8[%c0_12, %c0_13] : memref<8x1xf32, #tpu.memory_space<vmem>>, vector<8x1xf32>
    %14 = vector.broadcast %13 : vector<8x1xf32> to vector<8x16xf32>
    %15 = arith.addf %12, %14 : vector<8x16xf32>
    %cst_14 = arith.constant 0.000000e+00 : f32
    %16 = vector.broadcast %cst_14 : f32 to vector<8x16xf32>
    %17 = arith.subf %16, %15 : vector<8x16xf32>
    %18 = math.exp %17 : vector<8x16xf32>
    %cst_15 = arith.constant 1.000000e+00 : f32
    %19 = vector.broadcast %cst_15 : f32 to vector<8x16xf32>
    %20 = arith.addf %19, %18 : vector<8x16xf32>
    %cst_16 = arith.constant 1.000000e+00 : f32
    %21 = vector.broadcast %cst_16 : f32 to vector<8x16xf32>
    %22 = arith.divf %21, %20 : vector<8x16xf32>
    %c0_17 = arith.constant 0 : index
    %c0_18 = arith.constant 0 : index
    %23 = vector.load %arg9[%c0_17, %c0_18] : memref<8x16xf32, #tpu.memory_space<vmem>>, vector<8x16xf32>
    %24 = vector.extract_strided_slice %9 {offsets = [0, 16], sizes = [16, 16], strides = [1, 1]} : vector<16x32xf32> to vector<16x16xf32>
    %cst_19 = arith.constant dense<0.000000e+00> : vector<8x16xf32>
    %25 = tpu.matmul %23, %24, %cst_19 {dimension_numbers = #tpu.dot_dimension_numbers<[1], [0], [0], [1], [0, 0, 1, 1], [], []>, precision = #tpu.contract_precision<fp32>} : vector<8x16xf32>, vector<16x16xf32>, vector<8x16xf32> -> vector<8x16xf32>
    %c0_20 = arith.constant 0 : index
    %c0_21 = arith.constant 0 : index
    %26 = vector.load %arg10[%c0_20, %c0_21] : memref<8x1xf32, #tpu.memory_space<vmem>>, vector<8x1xf32>
    %27 = vector.broadcast %26 : vector<8x1xf32> to vector<8x16xf32>
    %28 = arith.addf %25, %27 : vector<8x16xf32>
    %cst_22 = arith.constant 0.000000e+00 : f32
    %29 = vector.broadcast %cst_22 : f32 to vector<8x16xf32>
    %30 = arith.subf %29, %28 : vector<8x16xf32>
    %31 = math.exp %30 : vector<8x16xf32>
    %cst_23 = arith.constant 1.000000e+00 : f32
    %32 = vector.broadcast %cst_23 : f32 to vector<8x16xf32>
    %33 = arith.addf %32, %31 : vector<8x16xf32>
    %cst_24 = arith.constant 1.000000e+00 : f32
    %34 = vector.broadcast %cst_24 : f32 to vector<8x16xf32>
    %35 = arith.divf %34, %33 : vector<8x16xf32>
    %c0_25 = arith.constant 0 : index
    %c0_26 = arith.constant 0 : index
    %36 = vector.load %arg3[%c0_25, %c0_26] : memref<16x256xbf16, #tpu.memory_space<vmem>>, vector<16x256xbf16>
    %37 = arith.truncf %22 : vector<8x16xf32> to vector<8x16xbf16>
    %38 = arith.extf %37 : vector<8x16xbf16> to vector<8x16xf32>
    %39 = arith.subf %22, %38 : vector<8x16xf32>
    %40 = arith.truncf %39 : vector<8x16xf32> to vector<8x16xbf16>
    %cst_27 = arith.constant dense<0.000000e+00> : vector<8x256xf32>
    %41 = tpu.matmul %37, %36, %cst_27 {dimension_numbers = #tpu.dot_dimension_numbers<[1], [0], [0], [1], [0, 0, 1, 1], [], []>} : vector<8x16xbf16>, vector<16x256xbf16>, vector<8x256xf32> -> vector<8x256xf32>
    %cst_28 = arith.constant dense<0.000000e+00> : vector<8x256xf32>
    %42 = tpu.matmul %40, %36, %cst_28 {dimension_numbers = #tpu.dot_dimension_numbers<[1], [0], [0], [1], [0, 0, 1, 1], [], []>} : vector<8x16xbf16>, vector<16x256xbf16>, vector<8x256xf32> -> vector<8x256xf32>
    %43 = arith.addf %41, %42 : vector<8x256xf32>
    %c0_29 = arith.constant 0 : index
    %c0_30 = arith.constant 0 : index
    %44 = vector.load %arg4[%c0_29, %c0_30] : memref<16x256xbf16, #tpu.memory_space<vmem>>, vector<16x256xbf16>
    %45 = arith.truncf %35 : vector<8x16xf32> to vector<8x16xbf16>
    %46 = arith.extf %45 : vector<8x16xbf16> to vector<8x16xf32>
    %47 = arith.subf %35, %46 : vector<8x16xf32>
    %48 = arith.truncf %47 : vector<8x16xf32> to vector<8x16xbf16>
    %cst_31 = arith.constant dense<0.000000e+00> : vector<8x256xf32>
    %49 = tpu.matmul %45, %44, %cst_31 {dimension_numbers = #tpu.dot_dimension_numbers<[1], [0], [0], [1], [0, 0, 1, 1], [], []>} : vector<8x16xbf16>, vector<16x256xbf16>, vector<8x256xf32> -> vector<8x256xf32>
    %cst_32 = arith.constant dense<0.000000e+00> : vector<8x256xf32>
    %50 = tpu.matmul %48, %44, %cst_32 {dimension_numbers = #tpu.dot_dimension_numbers<[1], [0], [0], [1], [0, 0, 1, 1], [], []>} : vector<8x16xbf16>, vector<16x256xbf16>, vector<8x256xf32> -> vector<8x256xf32>
    %51 = arith.addf %49, %50 : vector<8x256xf32>
    %52 = arith.mulf %43, %51 : vector<8x256xf32>
    %53 = arith.mulf %0, %52 : vector<8x256xf32>
    %c0_33 = arith.constant 0 : index
    %c0_34 = arith.constant 0 : index
    %54 = vector.load %arg11[%c0_33, %c0_34] : memref<8x256xf32, #tpu.memory_space<vmem>>, vector<8x256xf32>
    tpu.vector_store %arg11[%c0_33, %c0_34], %53 {strides = array<i32>} : memref<8x256xf32, #tpu.memory_space<vmem>>, vector<8x256xf32>,
    return
  }
  func.func @transform_0(%arg0: i32) -> (i32, i32) {
    %c0_i32 = arith.constant 0 : i32
    %c0_i32_0 = arith.constant 0 : i32
    return %arg0, %c0_i32 : i32, i32
  }
  func.func @transform_1(%arg0: i32) -> (i32, i32) {
    %c0_i32 = arith.constant 0 : i32
    %c0_i32_0 = arith.constant 0 : i32
    %c0_i32_1 = arith.constant 0 : i32
    return %c0_i32, %c0_i32_0 : i32, i32
  }
  func.func @transform_2(%arg0: i32) -> (i32, i32) {
    %c0_i32 = arith.constant 0 : i32
    %c0_i32_0 = arith.constant 0 : i32
    %c0_i32_1 = arith.constant 0 : i32
    return %c0_i32, %c0_i32_0 : i32, i32
  }
  func.func @transform_3(%arg0: i32) -> (i32, i32) {
    %c0_i32 = arith.constant 0 : i32
    %c0_i32_0 = arith.constant 0 : i32
    %c0_i32_1 = arith.constant 0 : i32
    return %c0_i32, %c0_i32_0 : i32, i32
  }
  func.func @transform_4(%arg0: i32) -> (i32, i32) {
    %c0_i32 = arith.constant 0 : i32
    %c0_i32_0 = arith.constant 0 : i32
    %c0_i32_1 = arith.constant 0 : i32
    return %c0_i32, %c0_i32_0 : i32, i32
  }
  func.func @transform_5(%arg0: i32) -> (i32, i32) {
    %c0_i32 = arith.constant 0 : i32
    %c0_i32_0 = arith.constant 0 : i32
    %c0_i32_1 = arith.constant 0 : i32
    return %c0_i32, %c0_i32_0 : i32, i32
  }
  func.func @transform_6(%arg0: i32) -> (i32, i32) {
    %c0_i32 = arith.constant 0 : i32
    %c0_i32_0 = arith.constant 0 : i32
    %c0_i32_1 = arith.constant 0 : i32
    return %c0_i32, %c0_i32_0 : i32, i32
  }
  func.func @transform_7(%arg0: i32) -> (i32, i32) {
    %c0_i32 = arith.constant 0 : i32
    %c0_i32_0 = arith.constant 0 : i32
    %c0_i32_1 = arith.constant 0 : i32
    return %c0_i32, %c0_i32_0 : i32, i32
  }
  func.func @transform_8(%arg0: i32) -> (i32, i32) {
    %c0_i32 = arith.constant 0 : i32
    %c0_i32_0 = arith.constant 0 : i32
    %c0_i32_1 = arith.constant 0 : i32
    return %c0_i32, %c0_i32_0 : i32, i32
  }
  func.func @transform_9(%arg0: i32) -> (i32, i32) {
    %c0_i32 = arith.constant 0 : i32
    %c0_i32_0 = arith.constant 0 : i32
    %c0_i32_1 = arith.constant 0 : i32
    return %c0_i32, %c0_i32_0 : i32, i32
  }
  func.func @transform_10(%arg0: i32) -> (i32, i32) {
    %c0_i32 = arith.constant 0 : i32
    %c0_i32_0 = arith.constant 0 : i32
    return %arg0, %c0_i32 : i32, i32
  }
}

</mosaic_0001>

<bundles_post_ra>
// kernel: tpu_custom_call.1
= control target key start
LH: loop header
LB: loop body
LE: loop exit
PB: predicated region body
PF: predicated region fallthrough
CT: control target
= control target key end

     0   :  { %s2314_s0 = inlined_call_operand.vmem [shape: f32[8,256], index: 0, kind: input, shape index: {}]   ;;  %s2315_s1 = inlined_call_operand.vmem [shape: f32[256,32], index: 1, kind: input, shape index: {}]   ;;  %s2316_s2 = inlined_call_operand.vmem [shape: bf16[16,256], index: 2, kind: input, shape index: {}]   ;;  %s2317_s3 = inlined_call_operand.vmem [shape: bf16[16,256], index: 3, kind: input, shape index: {}]   ;;  %s2318_s4 = inlined_call_operand.vmem [shape: f32[16,8], index: 4, kind: input, shape index: {}]   ;;  %s2319_s5 = inlined_call_operand.vmem [shape: f32[16,1], index: 5, kind: input, shape index: {}]   ;;  %s2320_s6 = inlined_call_operand.vmem [shape: f32[8,16], index: 6, kind: input, shape index: {}]   ;;  %s2321_s7 = inlined_call_operand.vmem [shape: f32[8,1], index: 7, kind: input, shape index: {}]   ;;  %s2322_s8 = inlined_call_operand.vmem [shape: f32[8,16], index: 8, kind: input, shape index: {}]   ;;  %s2323_s9 = inlined_call_operand.vmem [shape: f32[8,1], index: 9, kind: input, shape index: {}]   ;;  %s2324_s10 = inlined_call_operand.hbm [shape: f32[8,256], index: 10, kind: output, shape index: {}]  }
   0x1   :  { %v54_v0 = vld [vmem:[%s2315_s1 + $0x78] sm:$0xff]  ;;  %v53_v1 = vld [vmem:[%s2315_s1 + $0x70] sm:$0xff]  ;;  %v52_v2 = vld [vmem:[%s2315_s1 + $0x68] sm:$0xff] }
   0x2   :  { %v1642_v3 = vand.u32 4294901760, %v54_v0  ;;  %v1644_v4 = vand.u32 4294901760, %v53_v1  ;;  %v1646_v5 = vand.u32 4294901760, %v52_v2  ;;  %v51_v6 = vld [vmem:[%s2315_s1 + $0x60] sm:$0xff]  ;;  %v50_v7 = vld [vmem:[%s2315_s1 + $0x58] sm:$0xff]  ;;  %v49_v8 = vld [vmem:[%s2315_s1 + $0x50] sm:$0xff] }
   0x3   :  { %v1657_v9 = vand.u32 4294901760, %v51_v6  ;;  %v1659_v10 = vand.u32 4294901760, %v50_v7  ;;  %v1661_v11 = vand.u32 4294901760, %v49_v8  ;;  %v48_v12 = vld [vmem:[%s2315_s1 + $0x48] sm:$0xff]  ;;  %v47_v13 = vld [vmem:[%s2315_s1 + $0x40] sm:$0xff]  ;;  %v46_v18 = vld [vmem:[%s2315_s1 + $0x38] sm:$0xff] }
   0x4   :  { %72 = vmatpush.msra.mxu0 %v1642_v3  ;;  %v1671_v14 = vsub.f32 %v54_v0, %v1642_v3  ;;  %v1674_v15 = vsub.f32 %v53_v1, %v1644_v4  ;;  %268 = vmatpush.msra.mxu3 %v1642_v3  ;;  %v1678_v16 = vsub.f32 %v52_v2, %v1646_v5  ;;  %v1680_v17 = vand.u32 4294901760, %v48_v12  ;;  %v45_v26 = vld [vmem:[%s2315_s1 + $0x30] sm:$0xff]  ;;  %v44_v34 = vld [vmem:[%s2315_s1 + $0x28] sm:$0xff] }
   0x5   :  { %v1686_v19 = vsub.f32 %v51_v6, %v1657_v9  ;;  %v1689_v20 = vsub.f32 %v50_v7, %v1659_v10  ;;  %v1692_v21 = vsub.f32 %v49_v8, %v1661_v11  ;;  %v1699_v25 = vand.u32 4294901760, %v47_v13 }
   0x6   :  { %74 = vmatpush.msra.mxu0 %v1644_v4  ;;  %215 = vmatpush.msra.mxu2 %v1671_v14  ;;  %v114_v22 = vand.u32 4294901760, %v1671_v14  ;;  %v2340_v23 = vand.u32 4294901760, %v1674_v15  ;;  %v2338_v24 = vand.u32 4294901760, %v1678_v16  ;;  %v1706_v28 = vand.u32 4294901760, %v46_v18 }
   0x7   :  { %270 = vmatpush.msra.mxu3 %v1644_v4  ;;  %v2336_v27 = vand.u32 4294901760, %v1686_v19  ;;  %v1709_v29 = vsub.f32 %v48_v12, %v1680_v17  ;;  %v2334_v33 = vand.u32 4294901760, %v1689_v20 }
   0x8   :  { %76 = vmatpush.msra.mxu0 %v1646_v5  ;;  %218 = vmatpush.msra.mxu2 %v1674_v15  ;;  %v115_v30 = vsub.f32 %v1671_v14, %v114_v22  ;;  %v121_v31 = vsub.f32 %v1674_v15, %v2340_v23  ;;  %v127_v32 = vsub.f32 %v1678_v16, %v2338_v24 }
   0x9   :  { %15 = vsyncpa [#allocation3], 0  ;;  %272 = vmatpush.msra.mxu3 %v1646_v5  ;;  %v1727_v35 = vand.u32 4294901760, %v45_v26  ;;  %v2333_v36 = vand.u32 4294901760, %v1692_v21  ;;  %v133_v39 = vsub.f32 %v1686_v19, %v2336_v27  ;;  %v1736_v40 = vsub.f32 %v47_v13, %v1699_v25  ;;  %v43_v42 = vld [vmem:[%s2315_s1 + $0x20] sm:$0xff]  ;;  %v42_v48 = vld [vmem:[%s2315_s1 + $0x18] sm:$0xff] }
   0xa   :  { %78 = vmatpush.msra.mxu0 %v1657_v9  ;;  %v116_v37 = vand.u32 4294901760, %v115_v30  ;;  %221 = vmatpush.msra.mxu2 %v1678_v16  ;;  %v122_v38 = vand.u32 4294901760, %v121_v31  ;;  %v1739_v41 = vand.u32 4294901760, %v44_v34  ;;  %v128_v43 = vand.u32 4294901760, %v127_v32  ;;  %v41_v54 = vld [vmem:[%s2315_s1 + $0x10] sm:$0xff]  ;;  %v70_v59 = vld [vmem:[%s2315_s1 + $0xf8] sm:$0xff] }
   0xb   :  { %274 = vmatpush.msra.mxu3 %v1657_v9  ;;  %v139_v44 = vsub.f32 %v1689_v20, %v2334_v33  ;;  %v2331_v45 = vand.u32 4294901760, %v1709_v29  ;;  %v1750_v46 = vsub.f32 %v46_v18, %v1706_v28  ;;  %v145_v47 = vsub.f32 %v1692_v21, %v2333_v36  ;;  %v40_v61 = vld [vmem:[%s2315_s1 + $0x8] sm:$0xff]  ;;  %v39_v2 = vld [vmem:[%s2315_s1] sm:$0xff]  ;;  %v69_v6 = vld [vmem:[%s2315_s1 + $0xf0] sm:$0xff]  ;;  %s1499_s26 = sshll.u32 %s2324_s10, 4  ;;  %s1500_s26 = int_to_ptr.hbm [resolvable:$true] %s1499_s26 }
   0xc   :  { %80 = vmatpush.msra.mxu0 %v1659_v10  ;;  %117 = vmatpush.msra.mxu1 %v116_v37  ;;  %v134_v49 = vand.u32 4294901760, %v133_v39  ;;  %v1761_v50 = vand.u32 4294901760, %v43_v42  ;;  %v2330_v51 = vand.u32 4294901760, %v1736_v40  ;;  %v1765_v52 = vsub.f32 %v45_v26, %v1727_v35  ;;  %v68_v32 = vld [vmem:[%s2315_s1 + $0xe8] sm:$0xff] }
   0xd   :  { %224 = vmatpush.msra.mxu2 %v1686_v19  ;;  %276 = vmatpush.msra.mxu3 %v1659_v10  ;;  %v1770_v53 = vsub.f32 %v44_v34, %v1739_v41  ;;  %v140_v55 = vand.u32 4294901760, %v139_v44  ;;  %v151_v56 = vsub.f32 %v1709_v29, %v2331_v45  ;;  %v1779_v57 = vand.u32 4294901760, %v42_v48  ;;  %v67_v44 = vld [vmem:[%s2315_s1 + $0xe0] sm:$0xff] }
   0xe   :  { %82 = vmatpush.msra.mxu0 %v1661_v11  ;;  %123 = vmatpush.msra.mxu1 %v122_v38  ;;  %v2329_v58 = vand.u32 4294901760, %v1750_v46  ;;  %v146_v60 = vand.u32 4294901760, %v145_v47  ;;  %v157_v62 = vsub.f32 %v1736_v40, %v2330_v51  ;;  %v1794_v63 = vand.u32 4294901760, %v41_v54  ;;  %v63_v45 = vld [vmem:[%s2315_s1 + $0xc0] sm:$0xff] }
   0xf   :  { %227 = vmatpush.msra.mxu2 %v1689_v20  ;;  %278 = vmatpush.msra.mxu3 %v1661_v11  ;;  %v2327_v0 = vand.u32 4294901760, %v1765_v52  ;;  %v1798_v1 = vsub.f32 %v43_v42, %v1761_v50  ;;  %v2326_v7 = vand.u32 4294901760, %v1770_v53  ;;  %v1809_v8 = vand.u32 4294901760, %v70_v59 }
  0x10   :  { %84 = vmatpush.msra.mxu0 %v1680_v17  ;;  %129 = vmatpush.msra.mxu1 %v128_v43  ;;  %v152_v12 = vand.u32 4294901760, %v151_v56  ;;  %v163_v13 = vsub.f32 %v1750_v46, %v2329_v58  ;;  %v1815_v18 = vand.u32 4294901760, %v40_v61  ;;  %v1818_v26 = vsub.f32 %v42_v48, %v1779_v57 }
  0x11   :  { %230 = vmatpush.msra.mxu2 %v1692_v21  ;;  %280 = vmatpush.msra.mxu3 %v1680_v17  ;;  %v1822_v30 = vand.u32 4294901760, %v39_v2  ;;  %v1824_v31 = vand.u32 4294901760, %v69_v6  ;;  %v158_v34 = vand.u32 4294901760, %v157_v62  ;;  %v169_v37 = vsub.f32 %v1765_v52, %v2327_v0 }
  0x12   :  { %86 = vmatpush.msra.mxu0 %v1699_v25  ;;  %135 = vmatpush.msra.mxu1 %v134_v49  ;;  %v2325_v38 = vand.u32 4294901760, %v1798_v1  ;;  %v1835_v39 = vsub.f32 %v41_v54, %v1794_v63  ;;  %v175_v42 = vsub.f32 %v1770_v53, %v2326_v7  ;;  %v1843_v43 = vsub.f32 %v70_v59, %v1809_v8  ;;  %v66_v59 = vld [vmem:[%s2315_s1 + $0xd8] sm:$0xff]  ;;  %v64_v7 = vld [vmem:[%s2315_s1 + $0xc8] sm:$0xff] }
  0x13   :  { %233 = vmatpush.msra.mxu2 %v1709_v29  ;;  %282 = vmatpush.msra.mxu3 %v1699_v25  ;;  %v164_v47 = vand.u32 4294901760, %v163_v13  ;;  %v2328_v48 = vand.u32 4294901760, %v1818_v26  ;;  %v1851_v49 = vsub.f32 %v40_v61, %v1815_v18  ;;  %v1853_v54 = vand.u32 4294901760, %v68_v32  ;;  %v65_v13 = vld [vmem:[%s2315_s1 + $0xd0] sm:$0xff] }
  0x14   :  { %88 = vmatpush.msra.mxu0 %v1706_v28  ;;  %141 = vmatpush.msra.mxu1 %v140_v55  ;;  %v1858_v55 = vsub.f32 %v39_v2, %v1822_v30  ;;  %v1861_v56 = vsub.f32 %v69_v6, %v1824_v31  ;;  %v181_v61 = vsub.f32 %v1798_v1, %v2325_v38  ;;  %v2332_v62 = vand.u32 4294901760, %v1835_v39 }
  0x15   :  { %236 = vmatpush.msra.mxu2 %v1736_v40  ;;  %284 = vmatpush.msra.mxu3 %v1706_v28  ;;  %v176_v2 = vand.u32 4294901760, %v175_v42  ;;  %v2335_v6 = vand.u32 4294901760, %v1843_v43  ;;  %v1885_v38 = vsub.f32 %v68_v32, %v1853_v54  ;;  %v1887_v42 = vand.u32 4294901760, %v66_v59 }
  0x16   :  { %90 = vmatpush.msra.mxu0 %v1727_v35  ;;  %147 = vmatpush.msra.mxu1 %v146_v60  ;;  %v170_v60 = vand.u32 4294901760, %v169_v37  ;;  %v2337_v37 = vand.u32 4294901760, %v1851_v49  ;;  %v2339_v0 = vand.u32 4294901760, %v1861_v56  ;;  %v193_v32 = vsub.f32 %v1835_v39, %v2332_v62 }
  0x17   :  { %239 = vmatpush.msra.mxu2 %v1750_v46  ;;  %286 = vmatpush.msra.mxu3 %v1727_v35  ;;  %v1903_v51 = vand.u32 4294901760, %v65_v13  ;;  %v2342_v36 = vand.u32 4294901760, %v1885_v38  ;;  %v1921_v33 = vsub.f32 %v66_v59, %v1887_v42  ;;  %v1928_v27 = vand.u32 4294901760, %v63_v45 }
  0x18   :  { %92 = vmatpush.msra.mxu0 %v1739_v41  ;;  %153 = vmatpush.msra.mxu1 %v152_v12  ;;  %v1871_v12 = vand.u32 4294901760, %v67_v44  ;;  %v199_v62 = vsub.f32 %v1851_v49, %v2337_v37  ;;  %vm767_vm0 = vcmask 64512   ;;  %vm960_vm1 = vcmask 130048  }
  0x19   :  { %242 = vmatpush.msra.mxu2 %v1765_v52  ;;  %288 = vmatpush.msra.mxu3 %v1739_v41  ;;  %v1939_v24 = vsub.f32 %v65_v13, %v1903_v51  ;;  %v468_v13 = vsub.f32 %v1885_v38, %v2342_v36  ;;  %v2344_v14 = vand.u32 4294901760, %v1921_v33 }
  0x1a   :  { %94 = vmatpush.msra.mxu0 %v1761_v50  ;;  %159 = vmatpush.msra.mxu1 %v158_v34  ;;  %v187_v34 = vsub.f32 %v1818_v26, %v2328_v48  ;;  %v182_v48 = vand.u32 4294901760, %v181_v61  ;;  %v1901_v58 = vsub.f32 %v67_v44, %v1871_v12  ;;  %v1913_v61 = vand.u32 4294901760, %v64_v7 }
  0x1b   :  { %245 = vmatpush.msra.mxu2 %v1770_v53  ;;  %290 = vmatpush.msra.mxu3 %v1761_v50 }
  0x1c   :  { %96 = vmatpush.msra.mxu0 %v1779_v57  ;;  %165 = vmatpush.msra.mxu1 %v164_v47  ;;  %v2341_v47 = vand.u32 4294901760, %v1858_v55  ;;  %v188_v44 = vand.u32 4294901760, %v187_v34  ;;  %v194_v34 = vand.u32 4294901760, %v193_v32  ;;  %v2343_v37 = vand.u32 4294901760, %v1901_v58 }
  0x1d   :  { %248 = vmatpush.msra.mxu2 %v1798_v1  ;;  %292 = vmatpush.msra.mxu3 %v1779_v57  ;;  %v1945_v23 = vsub.f32 %v64_v7, %v1913_v61  ;;  %v200_v32 = vand.u32 4294901760, %v199_v62  ;;  %v60_v62 = vld [vmem:[%s2315_s1 + $0xa8] sm:$0xff] }
  0x1e   :  { %98 = vmatpush.msra.mxu0 %v1794_v63  ;;  %171 = vmatpush.msra.mxu1 %v170_v60  ;;  %v456_v60 = vsub.f32 %v1843_v43, %v2335_v6  ;;  %v462_v6 = vsub.f32 %v1861_v56, %v2339_v0  ;;  %v205_v59 = vsub.f32 %v1858_v55, %v2341_v47 }
  0x1f   :  { %251 = vmatpush.msra.mxu2 %v1818_v26  ;;  %294 = vmatpush.msra.mxu3 %v1794_v63  ;;  %v1961_v47 = vsub.f32 %v63_v45, %v1928_v27  ;;  %v474_v36 = vsub.f32 %v1901_v58, %v2343_v37  ;;  %v480_v37 = vsub.f32 %v1921_v33, %v2344_v14  ;;  %v2350_v14 = vand.u32 4294901760, %v1939_v24 }
  0x20   :  { %100 = vmatpush.msra.mxu0 %v1815_v18  ;;  %177 = vmatpush.msra.mxu1 %v176_v2  ;;  %v62_v2 = vld [vmem:[%s2315_s1 + $0xb8] sm:$0xff]  ;;  %v457_v0 = vand.u32 4294901760, %v456_v60  ;;  %v2347_v60 = vand.u32 4294901760, %v1674_v15  ;;  %v463_v7 = vand.u32 4294901760, %v462_v6  ;;  %v2348_v6 = vand.u32 4294901760, %v1678_v16 }
  0x21   :  { %254 = vmatpush.msra.mxu2 %v1835_v39  ;;  %296 = vmatpush.msra.mxu3 %v1815_v18  ;;  %v1986_v16 = vand.u32 4294901760, %v60_v62 }
  0x22   :  { %102 = vmatpush.msra.mxu0 %v1822_v30  ;;  %183 = vmatpush.msra.mxu1 %v182_v48  ;;  %v61_v48 = vld [vmem:[%s2315_s1 + $0xb0] sm:$0xff] }
  0x23   :  { %257 = vmatpush.msra.mxu2 %v1851_v49  ;;  %298 = vmatpush.msra.mxu3 %v1822_v30 }
  0x24   :  { %309 = vmatpush.msrb.mxu0 %v114_v22  ;;  %189 = vmatpush.msra.mxu1 %v188_v44  ;;  %v1955_v22 = vand.u32 4294901760, %v62_v2  ;;  %v206_v44 = vand.u32 4294901760, %v205_v59  ;;  %v469_v59 = vand.u32 4294901760, %v468_v13  ;;  %v475_v13 = vand.u32 4294901760, %v474_v36  ;;  %v2012_v36 = vld [vmem:[%s2314_s0] sm:$0xff] }
  0x25   :  { %260 = vmatpush.msra.mxu2 %v1858_v55  ;;  %458 = vmatpush.msrb.mxu3 %v457_v0  ;;  %v2349_v0 = vand.u32 4294901760, %v1686_v19  ;;  %2353 = vst [vmem:[#allocation5_spill] sm:$0xff] %v2012_v36 }
  0x26   :  { %313 = vmatpush.msrb.mxu0 %v2347_v60  ;;  %195 = vmatpush.msra.mxu1 %v194_v34  ;;  %v1971_v60 = vand.u32 4294901760, %v61_v48  ;;  %v59_v34 = vld [vmem:[%s2315_s1 + $0xa0] sm:$0xff]  ;;  %v1984_v15 = vsub.f32 %v62_v2, %v1955_v22  ;;  %v486_v2 = vsub.f32 %v1939_v24, %v2350_v14 }
  0x27   :  { %413 = vmatpush.msrb.mxu2 %v1809_v8  ;;  %464 = vmatpush.msrb.mxu3 %v463_v7  ;;  %v2001_v19 = vand.u32 4294901760, %v59_v34  ;;  %v2351_v7 = vand.u32 4294901760, %v1689_v20  ;;  %v2017_v20 = vsub.f32 %v60_v62, %v1986_v16 }
  0x28   :  { %317 = vmatpush.msrb.mxu0 %v2348_v6  ;;  %201 = vmatpush.msra.mxu1 %v200_v32  ;;  %v2345_v6 = vand.u32 4294901760, %v1961_v47  ;;  %v58_v32 = vld [vmem:[%s2315_s1 + $0x98] sm:$0xff]  ;;  %v1999_v45 = vsub.f32 %v61_v48, %v1971_v60  ;;  %v481_v48 = vand.u32 4294901760, %v480_v37  ;;  %v57_v37 = vld [vmem:[%s2315_s1 + $0x90] sm:$0xff]  ;;  %v487_v62 = vand.u32 4294901760, %v486_v2 }
  0x29   :  { %415 = vmatpush.msrb.mxu2 %v1824_v31  ;;  %470 = vmatpush.msrb.mxu3 %v469_v59  ;;  %v2033_v14 = vsub.f32 %v59_v34, %v2001_v19  ;;  %v2049_v59 = vand.u32 4294901760, %v57_v37 }
  0x2a   :  { %321 = vmatpush.msrb.mxu0 %v2349_v0  ;;  %207 = vmatpush.msra.mxu1 %v206_v44  ;;  %v2352_v0 = vand.u32 4294901760, %v1945_v23 }
  0x2b   :  { %417 = vmatpush.msrb.mxu2 %v1853_v54  ;;  %476 = vmatpush.msrb.mxu3 %v475_v13  ;;  %v2356_v13 = vand.u32 4294901760, %v1984_v15 }
  0x2c   :  { %325 = vmatpush.msrb.mxu0 %v2351_v7  ;;  %376 = vmatpush.msrb.mxu1 %v1642_v3  ;;  %v492_v44 = vsub.f32 %v1945_v23, %v2352_v0  ;;  %v2019_v7 = vand.u32 4294901760, %v58_v32  ;;  %v2354_v3 = vand.u32 4294901760, %v1692_v21  ;;  %v498_v0 = vsub.f32 %v1961_v47, %v2345_v6  ;;  %v56_v6 = vld [vmem:[%s2315_s1 + $0x88] sm:$0xff] }
  0x2d   :  { %419 = vmatpush.msrb.mxu2 %v1871_v12  ;;  %v2036_v21 = vand.u32 4294901760, %v2012_v36  ;;  %482 = vmatpush.msrb.mxu3 %v481_v48  ;;  %v504_v34 = vsub.f32 %v1984_v15, %v2356_v13  ;;  %v2358_v48 = vand.u32 4294901760, %v1999_v45  ;;  %v2080_v13 = vsub.f32 %v57_v37, %v2049_v59 }
  0x2e   :  { %329 = vmatpush.msrb.mxu0 %v2354_v3  ;;  %378 = vmatpush.msrb.mxu1 %v1644_v4  ;;  %v2355_v4 = vand.u32 4294901760, %v1709_v29  ;;  %v493_v3 = vand.u32 4294901760, %v492_v44  ;;  %v2052_v29 = vsub.f32 %v58_v32, %v2019_v7  ;;  %v499_v44 = vand.u32 4294901760, %v498_v0 }
  0x2f   :  { %421 = vmatpush.msrb.mxu2 %v1887_v42  ;;  %488 = vmatpush.msrb.mxu3 %v487_v62  ;;  %v2064_v2 = vsub.f32 %v2012_v36, %v2036_v21  ;;  %v2066_v32 = vand.u32 4294901760, %v56_v6  ;;  %v505_v0 = vand.u32 4294901760, %v504_v34  ;;  %v2360_v62 = vand.u32 4294901760, %v2017_v20 }
  0x30   :  { %333 = vmatpush.msrb.mxu0 %v2355_v4  ;;  %380 = vmatpush.msrb.mxu1 %v1646_v5  ;;  %v2357_v5 = vand.u32 4294901760, %v1736_v40  ;;  %v510_v4 = vsub.f32 %v1999_v45, %v2358_v48  ;;  %v2359_v40 = vand.u32 4294901760, %v1750_v46  ;;  %v527_v48 = vand.u32 4294901760, %v2052_v29 }
  0x31   :  { %423 = vmatpush.msrb.mxu2 %v1903_v51  ;;  %494 = vmatpush.msrb.mxu3 %v493_v3  ;;  %v2361_v36 = vand.u32 4294901760, %v1765_v52  ;;  %v2362_v3 = vand.u32 4294901760, %v2033_v14  ;;  %v2093_v37 = vsub.f32 %v56_v6, %v2066_v32  ;;  %v2363_v52 = vand.u32 4294901760, %v1770_v53 }
  0x32   :  { %337 = vmatpush.msrb.mxu0 %v2357_v5  ;;  %382 = vmatpush.msrb.mxu1 %v1657_v9  ;;  %v55_v9 = vld [vmem:[%s2315_s1 + $0x80] sm:$0xff]  ;;  %v516_v5 = vsub.f32 %v2017_v20, %v2360_v62  ;;  %v533_v6 = vand.u32 4294901760, %v2080_v13  ;;  %v2364_v53 = vand.u32 4294901760, %v1798_v1 }
  0x33   :  { %425 = vmatpush.msrb.mxu2 %v1913_v61  ;;  %v2085_v46 = vand.u32 4294901760, %v55_v9  ;;  %500 = vmatpush.msrb.mxu3 %v499_v44  ;;  %v522_v34 = vsub.f32 %v2033_v14, %v2362_v3  ;;  %v528_v44 = vsub.f32 %v2052_v29, %v527_v48  ;;  %v539_v62 = vand.u32 4294901760, %v2093_v37 }
  0x34   :  { %341 = vmatpush.msrb.mxu0 %v2359_v40  ;;  %384 = vmatpush.msrb.mxu1 %v1659_v10  ;;  %v511_v10 = vand.u32 4294901760, %v510_v4  ;;  %v105_v40 = vand.u32 4294901760, %v2064_v2  ;;  %v2365_v3 = vand.u32 4294901760, %v1818_v26  ;;  %v534_v1 = vsub.f32 %v2080_v13, %v533_v6 }
  0x35   :  { %427 = vmatpush.msrb.mxu2 %v1928_v27  ;;  %506 = vmatpush.msrb.mxu3 %v505_v0  ;;  %v523_v4 = vand.u32 4294901760, %v522_v34 }
  0x36   :  { %345 = vmatpush.msrb.mxu0 %v2361_v36  ;;  %386 = vmatpush.msrb.mxu1 %v1661_v11  ;;  %v2101_v11 = vld [vmem:[%s2314_s0 + $0x8] sm:$0xff]  ;;  %v517_v36 = vand.u32 4294901760, %v516_v5  ;;  %v106_v0 = vsub.f32 %v2064_v2, %v105_v40 }
  0x37   :  { %429 = vmatpush.msrb.mxu2 %v1955_v22  ;;  %512 = vmatpush.msrb.mxu3 %v511_v10  ;;  %v2118_v5 = vand.u32 4294901760, %v2101_v11 }
  0x38   :  { %349 = vmatpush.msrb.mxu0 %v2363_v52  ;;  %388 = vmatpush.msrb.mxu1 %v1680_v17  ;;  %v2112_v17 = vsub.f32 %v55_v9, %v2085_v46  ;;  %v2366_v9 = vand.u32 4294901760, %v1835_v39  ;;  %v107_v26 = vand.u32 4294901760, %v106_v0  ;;  %v2367_v52 = vand.u32 4294901760, %v1851_v49 }
  0x39   :  { %431 = vmatpush.msrb.mxu2 %v1971_v60  ;;  %518 = vmatpush.msrb.mxu3 %v517_v36  ;;  %v2137_v34 = vsub.f32 %v2101_v11, %v2118_v5  ;;  %v2368_v39 = vand.u32 4294901760, %v1858_v55 }
  0x3a   :  { %353 = vmatpush.msrb.mxu0 %v2364_v53  ;;  %390 = vmatpush.msrb.mxu1 %v1699_v25  ;;  %v529_v25 = vand.u32 4294901760, %v528_v44  ;;  %v545_v10 = vand.u32 4294901760, %v2112_v17 }
  0x3b   :  { %433 = vmatpush.msrb.mxu2 %v1986_v16  ;;  %524 = vmatpush.msrb.mxu3 %v523_v4  ;;  %v446_v44 = vand.u32 4294901760, %v2137_v34 }
  0x3c   :  { %357 = vmatpush.msrb.mxu0 %v2365_v3  ;;  %392 = vmatpush.msrb.mxu1 %v1706_v28  ;;  %v540_v28 = vsub.f32 %v2093_v37, %v539_v62  ;;  %v546_v36 = vsub.f32 %v2112_v17, %v545_v10 }
  0x3d   :  { %435 = vmatpush.msrb.mxu2 %v2001_v19  ;;  %530 = vmatpush.msrb.mxu3 %v529_v25 }
  0x3e   :  { %361 = vmatpush.msrb.mxu0 %v2366_v9  ;;  %394 = vmatpush.msrb.mxu1 %v1727_v35  ;;  %v535_v35 = vand.u32 4294901760, %v534_v1  ;;  %v541_v49 = vand.u32 4294901760, %v540_v28 }
  0x3f   :  { %437 = vmatpush.msrb.mxu2 %v2019_v7  ;;  %108 = vmatmul.f32.vlgmr.msra.gmra.mxu0 %v107_v26 }
  0x40   :  { %365 = vmatpush.msrb.mxu0 %v2367_v52  ;;  %396 = vmatpush.msrb.mxu1 %v1739_v41  ;;  %v547_v41 = vand.u32 4294901760, %v546_v36 }
  0x41   :  { %439 = vmatpush.msrb.mxu2 %v2049_v59  ;;  %536 = vmatpush.msrb.mxu3 %v535_v35 }
  0x42   :  { %369 = vmatpush.msrb.mxu0 %v2368_v39  ;;  %398 = vmatpush.msrb.mxu1 %v1761_v50  ;;  %v447_v50 = vsub.f32 %v2137_v34, %v446_v44 }
  0x43   :  { %441 = vmatpush.msrb.mxu2 %v2066_v32  ;;  %542 = vmatpush.msrb.mxu3 %v541_v49 }
  0x44   :  { %556 = vmatpush.msra.mxu0 %v1843_v43  ;;  %400 = vmatpush.msrb.mxu1 %v1779_v57  ;;  %v2369_v57 = vand.u32 4294901760, %v1843_v43  ;;  %v448_v55 = vand.u32 4294901760, %v447_v50  ;;  %v2371_v43 = vand.u32 4294901760, %v1885_v38 }
  0x45   :  { %263 = vmatmul.f32.vlgmr.msra.gmra.mxu2 %v2064_v2  ;;  %302 = vmatmul.f32.vlgmr.msra.gmra.mxu3 %v105_v40 }
  0x46   :  { %559 = vmatpush.msra.mxu0 %v1861_v56  ;;  %402 = vmatpush.msrb.mxu1 %v1794_v63  ;;  %v2370_v63 = vand.u32 4294901760, %v1861_v56 }
  0x47   :  { %443 = vmatpush.msrb.mxu2 %v2085_v46  ;;  %548 = vmatpush.msrb.mxu3 %v547_v41 }
  0x48   :  { %562 = vmatpush.msra.mxu0 %v1885_v38  ;;  %404 = vmatpush.msrb.mxu1 %v1815_v18  ;;  %v2372_v18 = vand.u32 4294901760, %v1901_v58 }
  0x49   :  { %650 = vmatpush.msra.mxu2 %v2369_v57  ;;  %209 = vmatmul.f32.vlgmr.msra.gmra.mxu1 %v2036_v21 }
  0x4a   :  { %565 = vmatpush.msra.mxu0 %v1901_v58  ;;  %717 = vmatpush.msra.mxu3 %v1809_v8  ;;  %v2374_v58 = vand.u32 4294901760, %v1939_v24 }
  0x4b   :  { %654 = vmatpush.msra.mxu2 %v2370_v63  ;;  %406 = vmatpush.msrb.mxu1 %v1822_v30  ;;  %v2376_v30 = vand.u32 4294901760, %v1961_v47 }
  0x4c   :  { %568 = vmatpush.msra.mxu0 %v1921_v33  ;;  %719 = vmatpush.msra.mxu3 %v1824_v31 }
  0x4d   :  { %609 = vmatpush.msra.mxu1 %v1809_v8  ;;  %658 = vmatpush.msra.mxu2 %v2371_v43  ;;  %v2373_v8 = vand.u32 4294901760, %v1921_v33  ;;  %v2375_v33 = vand.u32 4294901760, %v1945_v23 }
  0x4e   :  { %449 = vmatmul.f32.vlgmr.msrb.gmra.mxu2 %v448_v55  ;;  %571 = vmatpush.msra.mxu0 %v1939_v24  ;;  %v2377_v24 = vand.u32 4294901760, %v1984_v15 }
  0x4f   :  { %611 = vmatpush.msra.mxu1 %v1824_v31  ;;  %662 = vmatpush.msra.mxu2 %v2372_v18 }
  0x50   :  { %721 = vmatpush.msra.mxu3 %v1853_v54  ;;  %371 = vmatmul.f32.vlgmr.msrb.gmra.mxu0 %v2036_v21 }
  0x51   :  { %550 = vmatmul.f32.vlgmr.msrb.gmra.mxu3 %v2118_v5  ;;  %574 = vmatpush.msra.mxu0 %v1945_v23  ;;  %v2378_v23 = vand.u32 4294901760, %v1999_v45 }
  0x52   :  { %613 = vmatpush.msra.mxu1 %v1853_v54  ;;  %666 = vmatpush.msra.mxu2 %v2373_v8 }
  0x53   :  { %723 = vmatpush.msra.mxu3 %v1871_v12  ;;  %408 = vmatmul.f32.vlgmr.msrb.gmra.mxu1 %v2036_v21  ;;  %v754_v21 = vld [vmem:[%s2318_s4 + $0x8] sm:$0xff] }
  0x54   :  { %577 = vmatpush.msra.mxu0 %v1961_v47  ;;  %615 = vmatpush.msra.mxu1 %v1871_v12 }
  0x55   :  { %670 = vmatpush.msra.mxu2 %v2374_v58  ;;  %725 = vmatpush.msra.mxu3 %v1887_v42 }
  0x56   :  { %580 = vmatpush.msra.mxu0 %v1984_v15  ;;  %617 = vmatpush.msra.mxu1 %v1887_v42  ;;  %v753_v15 = vld [vmem:[%s2318_s4] sm:$0xff] }
  0x57   :  { %674 = vmatpush.msra.mxu2 %v2375_v33  ;;  %727 = vmatpush.msra.mxu3 %v1903_v51 }
  0x58   :  { %583 = vmatpush.msra.mxu0 %v1999_v45  ;;  %619 = vmatpush.msra.mxu1 %v1903_v51  ;;  %v2379_v51 = vand.u32 4294901760, %v2017_v20  ;;  %v769_v45 = vsel %vm767_vm0, %v753_v15, 0 }
  0x59   :  { %678 = vmatpush.msra.mxu2 %v2376_v30  ;;  %729 = vmatpush.msra.mxu3 %v1913_v61  ;;  %v953_v30 = vld [vmem:[%s2320_s6] sm:$0xff]  ;;  %s1576_s6 = smov 112  }
  0x5a   :  { %586 = vmatpush.msra.mxu0 %v2017_v20  ;;  %621 = vmatpush.msra.mxu1 %v1913_v61 }
  0x5b   :  { %682 = vmatpush.msra.mxu2 %v2377_v24  ;;  %731 = vmatpush.msra.mxu3 %v1928_v27 }
  0x5c   :  { %589 = vmatpush.msra.mxu0 %v2033_v14  ;;  %623 = vmatpush.msra.mxu1 %v1928_v27  ;;  %v2380_v27 = vand.u32 4294901760, %v2033_v14 }
  0x5d   :  { %686 = vmatpush.msra.mxu2 %v2378_v23  ;;  %733 = vmatpush.msra.mxu3 %v1955_v22 }
  0x5e   :  { %592 = vmatpush.msra.mxu0 %v2052_v29  ;;  %625 = vmatpush.msra.mxu1 %v1955_v22 }
  0x5f   :  { %690 = vmatpush.msra.mxu2 %v2379_v51  ;;  %735 = vmatpush.msra.mxu3 %v1971_v60  ;;  %v962_v51 = vsel %vm960_vm1, %v953_v30, 0 }
  0x60   :  { %595 = vmatpush.msra.mxu0 %v2080_v13  ;;  %627 = vmatpush.msra.mxu1 %v1971_v60  ;;  %v755_v13 = vld [vmem:[%s2319_s5] sm:$0xff] }
  0x61   :  { %694 = vmatpush.msra.mxu2 %v2380_v27  ;;  %737 = vmatpush.msra.mxu3 %v1986_v16 }
  0x62   :  { %598 = vmatpush.msra.mxu0 %v2093_v37  ;;  %629 = vmatpush.msra.mxu1 %v1986_v16  ;;  %v1575_v16 = vmov 0  }
  0x63   :  { %698 = vmatpush.msra.mxu2 %v527_v48  ;;  %739 = vmatpush.msra.mxu3 %v2001_v19  ;;  %v772_v48 = vsel %vm767_vm0, %v754_v21, 0 }
  0x64   :  { %601 = vmatpush.msra.mxu0 %v2112_v17  ;;  %631 = vmatpush.msra.mxu1 %v2001_v19  ;;  %v756_v19 = vld [vmem:[%s2319_s5 + $0x8] sm:$0xff] }
  0x65   :  { %702 = vmatpush.msra.mxu2 %v533_v6  ;;  %741 = vmatpush.msra.mxu3 %v2019_v7  ;;  %v799_v6 = vand.u32 4294901760, %v772_v48 }
  0x66   :  { %604 = vmatmul.f32.vlgmr.msra.gmra.mxu0 %v2137_v34  ;;  %633 = vmatpush.msra.mxu1 %v2019_v7  ;;  %v791_v7 = vand.u32 4294901760, %v769_v45 }
  0x67   :  { %706 = vmatpush.msra.mxu2 %v539_v62  ;;  %743 = vmatpush.msra.mxu3 %v2049_v59  ;;  %v800_v62 = vsub.f32 %v772_v48, %v799_v6 }
  0x68   :  { %635 = vmatpush.msra.mxu1 %v2049_v59  ;;  %1539 = vset.pattern.permute.xlu0 %v1575_v16  ;;  %v792_v29 = vsub.f32 %v769_v45, %v791_v7 }
  0x69   :  { %710 = vmatpush.msra.mxu2 %v545_v10  ;;  %745 = vmatpush.msra.mxu3 %v2066_v32  ;;  %v801_v9 = vand.u32 4294901760, %v800_v62 }
  0x6a   :  { %712 = vmatmul.f32.vlgmr.msra.gmra.mxu2 %v2118_v5  ;;  %637 = vmatpush.msra.mxu1 %v2066_v32  ;;  %v793_v37 = vand.u32 4294901760, %v792_v29 }
  0x6b   :  { %747 = vmatpush.msra.mxu3 %v2085_v46  ;;  %1540 = vset.pattern.permute.xlu2 %v1575_v16  ;;  %v802_v28 = vsub.f32 %v800_v62, %v801_v9 }
  0x6c   :  { %749 = vmatmul.f32.vlgmr.msra.gmra.mxu3 %v2118_v5  ;;  %639 = vmatpush.msra.mxu1 %v2085_v46  ;;  %v794_v0 = vsub.f32 %v792_v29, %v793_v37 }
  0x6d   :  { %643 = vmatmul.f32.vlgmr.msra.gmra.mxu1 %v446_v44  ;;  %764 = vperm.xlu0 %1539, %v756_v19   ;;  %v803_v35 = vand.u32 4294901760, %v802_v28 }
  0x6e   :  { %v795_v1 = vand.u32 4294901760, %v794_v0 }
  0x75   :  { %759 = vperm.xlu0 %1539, %v755_v13  }
  0xbc   :  { %v109_v38 = vpop.f32.mrf.mxu0 }
  0xc6   :  { %v210_v31 = vpop.f32.mrf.mxu1 }
  0xc7   :  { %v211_v54 = vadd.f32 %v210_v31, %v109_v38  ;;  %v982_v38 = vand.u32 4294901760, %v962_v51 }
  0xc8   :  { %v264_v56 = vpop.f32.mrf.mxu2  ;;  %v303_v42 = vpop.f32.mrf.mxu3 }
  0xc9   :  { %v265_v12 = vadd.f32 %v264_v56, %v211_v54 }
  0xcb   :  { %v304_v47 = vadd.f32 %v303_v42, %v265_v12 }
  0xcd   :  { %v372_v61 = vpop.f32.mrf.mxu0 }
  0xce   :  { %v373_v22 = vadd.f32 %v372_v61, %v304_v47  ;;  %v983_v61 = vsub.f32 %v962_v51, %v982_v38 }
  0xd0   :  { %v409_v60 = vpop.f32.mrf.mxu1  ;;  %v984_v16 = vand.u32 4294901760, %v983_v61 }
  0xd1   :  { %v410_v14 = vadd.f32 %v409_v60, %v373_v22  ;;  %v450_v20 = vpop.f32.mrf.mxu2 }
  0xd3   :  { %v451_v59 = vadd.f32 %v450_v20, %v410_v14 }
  0xd4   :  { %v551_v2 = vpop.f32.mrf.mxu3 }
  0xd5   :  { %v552_v46 = vadd.f32 %v551_v2, %v451_v59  ;;  %v985_v59 = vsub.f32 %v983_v61, %v984_v16 }
  0xd7   :  { %v986_v13 = vand.u32 4294901760, %v985_v59  ;;  %v1512_v59 = vld [vmem:[%s2316_s2 + $0x8] sm:$0xf0] }
  0xdf   :  { %v765_v36 = vpop.permute.xlu0 %764 }
  0xe3   :  { %v605_v32 = vpop.f32.mrf.mxu0 }
  0xe4   :  { %v606_v40 = vadd.f32 %v605_v32, %v552_v46 }
  0xe7   :  { %v760_v44 = vpop.permute.xlu0 %759 }
  0xea   :  { %v644_v53 = vpop.f32.mrf.mxu1 }
  0xeb   :  { %v645_v17 = vadd.f32 %v644_v53, %v606_v40  ;;  %v1142_v53 = vld [vmem:[%s2322_s8] sm:$0xff] }
  0xed   :  { %v713_v4 = vpop.f32.mrf.mxu2 }
  0xee   :  { %v714_v5 = vadd.f32 %v713_v4, %v645_v17  ;;  %v1158_v17 = vsel %vm960_vm1, %v1142_v53, 0 }
  0xef   :  { %v750_v3 = vpop.f32.mrf.mxu3  ;;  %v1178_v4 = vand.u32 4294901760, %v1158_v17 }
  0xf0   :  { %v751_v25 = vadd.f32 %v750_v3, %v714_v5 }
  0xf1   :  { %v1179_v0 = vsub.f32 %v1158_v17, %v1178_v4 }
  0xf2   :  { %v789_v10 = vand.u32 4294901760, %v751_v25 }
  0xf3   :  { %v1180_v3 = vand.u32 4294901760, %v1179_v0 }
  0xf4   :  { %v824_v26 = vsub.f32 %v751_v25, %v789_v10  ;;  %790 = vmatpush.msrb.mxu0 %v789_v10  ;;  %883 = vmatpush.msrb.mxu3 %v789_v10 }
  0xf5   :  { %796 = vmatmul.f32.vlgmr.msrb.gmra.mxu0 %v795_v1  ;;  %887 = vmatmul.f32.vlgmr.msrb.gmra.mxu3 %v793_v37 }
  0xf6   :  { %v825_v34 = vand.u32 4294901760, %v824_v26  ;;  %855 = vmatpush.msrb.mxu2 %v824_v26 }
  0xf7   :  { %858 = vmatmul.f32.vlgmr.msrb.gmra.mxu2 %v792_v29 }
  0xf8   :  { %v826_v52 = vsub.f32 %v824_v26, %v825_v34  ;;  %915 = vmatpush.msra.mxu0 %v825_v34 }
  0xfa   :  { %v827_v39 = vand.u32 4294901760, %v826_v52 }
  0xfc   :  { %828 = vmatpush.msrb.mxu1 %v827_v39 }
  0xfd   :  { %830 = vmatmul.f32.vlgmr.msrb.gmra.mxu1 %v791_v7  ;;  %804 = vmatmul.f32.gmra.mxu0 %v803_v35 }
  0xfe   :  { %941 = vmatpush.msra.mxu1 %v789_v10  ;;  %893 = vmatmul.f32.gmra.mxu3 %v801_v9  ;;  %v1181_v9 = vsub.f32 %v1179_v0, %v1180_v3 }
  0xff   :  { %863 = vmatmul.f32.gmra.mxu2 %v800_v62  ;;  %v1143_v62 = vld [vmem:[%s2323_s9] sm:$0xff] }
 0x100   :  { %v1182_v34 = vand.u32 4294901760, %v1181_v9 }
 0x105   :  { %834 = vmatmul.f32.gmra.mxu1 %v799_v6  ;;  %917 = vmatmul.f32.vlgmr.msra.gmra.mxu0 %v791_v7 }
 0x10d   :  { %943 = vmatmul.f32.vlgmr.msra.gmra.mxu1 %v791_v7  ;;  %921 = vmatmul.f32.gmra.mxu0 %v799_v6 }
 0x115   :  { %947 = vmatmul.f32.gmra.mxu1 %v799_v6  ;;  %v954_v6 = vld [vmem:[%s2321_s7] sm:$0xff] }
 0x116   :  { %957 = vperm.xlu2 %1540, %v954_v6  }
 0x11e   :  { %1146 = vperm.xlu2 %1540, %v1143_v62   ;;  %v1534_v62 = vld [vmem:[%s2317_s3 + $0x4] sm:$0xf] }
 0x172   :  { %v797_v49 = vpop.f32.mrf.mxu0 }
 0x173   :  { %v798_v57 = vadd.f32 %v797_v49, %v760_v44 }
 0x178   :  { %v888_v18 = vpop.f32.mrf.mxu3 }
 0x17a   :  { %v831_v41 = vpop.f32.mrf.mxu1  ;;  %v805_v50 = vpop.f32.mrf.mxu0 }
 0x17b   :  { %v859_v63 = vpop.f32.mrf.mxu2  ;;  %v832_v55 = vadd.f32 %v831_v41, %v798_v57  ;;  %v806_v8 = vadd.f32 %v805_v50, %v765_v36  ;;  %v958_v57 = vpop.permute.xlu2 %957 }
 0x17d   :  { %v860_v58 = vadd.f32 %v859_v63, %v832_v55 }
 0x17f   :  { %v889_v23 = vadd.f32 %v888_v18, %v860_v58 }
 0x181   :  { %v894_v42 = vpop.f32.mrf.mxu3 }
 0x182   :  { %v835_v43 = vpop.f32.mrf.mxu1  ;;  %v918_v33 = vpop.f32.mrf.mxu0 }
 0x183   :  { %v836_v24 = vadd.f32 %v835_v43, %v806_v8  ;;  %v864_v27 = vpop.f32.mrf.mxu2  ;;  %v919_v31 = vadd.f32 %v918_v33, %v889_v23 }
 0x185   :  { %v865_v56 = vadd.f32 %v864_v27, %v836_v24 }
 0x187   :  { %v895_v15 = vadd.f32 %v894_v42, %v865_v56 }
 0x18a   :  { %v944_v54 = vpop.f32.mrf.mxu1  ;;  %v922_v22 = vpop.f32.mrf.mxu0 }
 0x18b   :  { %v945_v12 = vadd.f32 %v944_v54, %v919_v31  ;;  %v923_v45 = vadd.f32 %v922_v22, %v895_v15 }
 0x18d   :  { %v951_v47 = vmax.f32 %v945_v12, 0.0 }
 0x18f   :  { %v980_v60 = vand.u32 4294901760, %v951_v47 }
 0x191   :  { %v1012_v7 = vsub.f32 %v951_v47, %v980_v60 }
 0x192   :  { %v948_v19 = vpop.f32.mrf.mxu1 }
 0x193   :  { %v949_v14 = vadd.f32 %v948_v19, %v923_v45  ;;  %v1013_v29 = vand.u32 4294901760, %v1012_v7  ;;  %v1533_v19 = vld [vmem:[%s2316_s2 + $0x4] sm:$0xf0] }
 0x195   :  { %v952_v20 = vmax.f32 %v949_v14, 0.0  ;;  %v1014_v46 = vsub.f32 %v1012_v7, %v1013_v29  ;;  %v1532_v14 = vld [vmem:[%s2316_s2 + $0x4] sm:$0xf] }
 0x197   :  { %v978_v21 = vand.u32 4294901760, %v952_v20  ;;  %1153 = vrot.lane.b32.xlu1 %v952_v20, %s1576_s6  ;;  %v1015_v37 = vand.u32 4294901760, %v1014_v46 }
 0x199   :  { %v1006_v2 = vsub.f32 %v952_v20, %v978_v21  ;;  %979 = vmatpush.msra.mxu2 %v978_v21  ;;  %1115 = vmatpush.msrb.mxu1 %v978_v21 }
 0x19b   :  { %981 = vmatpush.msra.mxu2 %v980_v60  ;;  %1117 = vmatpush.msrb.mxu1 %v980_v60  ;;  %v1007_v32 = vand.u32 4294901760, %v1006_v2 }
 0x19c   :  { %1119 = vmatmul.f32.vlgmr.msrb.gmra.mxu1 %v982_v38  ;;  %987 = vmatmul.f32.vlgmr.msra.gmra.mxu2 %v986_v13 }
 0x19d   :  { %1038 = vmatpush.msrb.mxu2 %v1006_v2  ;;  %1090 = vmatpush.msrb.mxu0 %v1007_v32  ;;  %v1008_v48 = vsub.f32 %v1006_v2, %v1007_v32 }
 0x19f   :  { %1041 = vmatpush.msrb.mxu2 %v1012_v7  ;;  %1151 = vrot.lane.b32.xlu1 %v951_v47, %s1576_s6  ;;  %v1009_v40 = vand.u32 4294901760, %v1008_v48  ;;  %v1147_v48 = vpop.permute.xlu2 %1146 }
 0x1a0   :  { %1094 = vmatpush.msrb.mxu0 %v1013_v29 }
 0x1a1   :  { %1096 = vmatmul.f32.vlgmr.msrb.gmra.mxu0 %v982_v38  ;;  %1010 = vmatpush.msra.mxu3 %v1009_v40 }
 0x1a3   :  { %1016 = vmatpush.msra.mxu3 %v1015_v37 }
 0x1a4   :  { %1018 = vmatmul.f32.vlgmr.msra.gmra.mxu3 %v982_v38  ;;  %1044 = vmatmul.f32.vlgmr.msrb.gmra.mxu2 %v983_v61 }
 0x1a5   :  { %1063 = vmatpush.msrb.mxu3 %v978_v21  ;;  %v1515_v21 = vor.u32 %v1532_v14, %v1512_v59  ;;  %v2381_v14 = vld [vmem:[#allocation5_spill] sm:$0xff] }
 0x1a7   :  { %1065 = vmatpush.msrb.mxu3 %v980_v60 }
 0x1ac   :  { %1069 = vmatmul.f32.vlgmr.msrb.gmra.mxu3 %v984_v16  ;;  %v1510_v16 = vld [vmem:[%s2316_s2] sm:$0xf] }
 0x1ad   :  { %v1511_v7 = vor.u32 %v1533_v19, %v1510_v16 }
 0x209   :  { %v1154_v5 = vpop.permute.xlu1 %1153 }
 0x20a   :  { %v1174_v25 = vand.u32 4294901760, %v1154_v5 }
 0x20c   :  { %v1202_v1 = vsub.f32 %v1154_v5, %v1174_v25  ;;  %1175 = vmatpush.msra.mxu2 %v1174_v25  ;;  %1259 = vmatpush.msra.mxu1 %v1174_v25 }
 0x20e   :  { %v1203_v10 = vand.u32 4294901760, %v1202_v1  ;;  %1234 = vmatpush.msra.mxu0 %v1202_v1 }
 0x210   :  { %v1204_v26 = vsub.f32 %v1202_v1, %v1203_v10 }
 0x211   :  { %v1152_v28 = vpop.permute.xlu1 %1151 }
 0x212   :  { %v1205_v52 = vand.u32 4294901760, %v1204_v26  ;;  %v1176_v35 = vand.u32 4294901760, %v1152_v28 }
 0x214   :  { %v1208_v39 = vsub.f32 %v1152_v28, %v1176_v35  ;;  %1177 = vmatpush.msra.mxu2 %v1176_v35  ;;  %1206 = vmatpush.msra.mxu3 %v1205_v52 }
 0x215   :  { %1261 = vmatpush.msra.mxu1 %v1176_v35  ;;  %1183 = vmatmul.f32.vlgmr.msra.gmra.mxu2 %v1182_v34 }
 0x216   :  { %1286 = vmatpush.msrb.mxu2 %v1203_v10  ;;  %1237 = vmatpush.msra.mxu0 %v1208_v39  ;;  %v1209_v36 = vand.u32 4294901760, %v1208_v39 }
 0x217   :  { %1240 = vmatmul.f32.vlgmr.msra.gmra.mxu0 %v1179_v0  ;;  %1265 = vmatmul.f32.vlgmr.msra.gmra.mxu1 %v1180_v3  ;;  %v1535_v0 = vld [vmem:[%s2317_s3 + $0x4] sm:$0xf0] }
 0x218   :  { %1290 = vmatpush.msrb.mxu2 %v1209_v36  ;;  %v1210_v49 = vsub.f32 %v1208_v39, %v1209_v36  ;;  %1364 = vmatpush.bf16.msrb.mxu0 %v1511_v7 }
 0x219   :  { %v1120_v30 = vpop.f32.mrf.mxu1  ;;  %1377 = vmatpush.bf16.msrb.mxu1 %v1515_v21 }
 0x21a   :  { %v1211_v44 = vand.u32 4294901760, %v1210_v49  ;;  %1393 = vmatpush.bf16.msra.mxu2 %v1511_v7 }
 0x21c   :  { %1212 = vmatpush.msra.mxu3 %v1211_v44 }
 0x21d   :  { %1214 = vmatmul.f32.vlgmr.msra.gmra.mxu3 %v1178_v4  ;;  %1292 = vmatmul.f32.vlgmr.msrb.gmra.mxu2 %v1178_v4 }
 0x21e   :  { %1311 = vmatpush.msrb.mxu3 %v1174_v25  ;;  %v1097_v58 = vpop.f32.mrf.mxu0  ;;  %v1524_v25 = vld [vmem:[%s2317_s3 + $0x8] sm:$0xf0] }
 0x21f   :  { %v988_v41 = vpop.f32.mrf.mxu2  ;;  %v1527_v9 = vor.u32 %v1534_v62, %v1524_v25 }
 0x220   :  { %1313 = vmatpush.msrb.mxu3 %v1176_v35  ;;  %v989_v63 = vadd.f32 %v988_v41, %v958_v57 }
 0x221   :  { %1451 = vmatpush.bf16.msra.mxu1 %v1527_v9 }
 0x222   :  { %1406 = vmatpush.bf16.msra.mxu3 %v1515_v21 }
 0x225   :  { %1315 = vmatmul.f32.vlgmr.msrb.gmra.mxu3 %v1178_v4  ;;  %v1522_v4 = vld [vmem:[%s2317_s3] sm:$0xf]  ;;  %s1577_s3 = smov [#allocation2]  }
 0x226   :  { %v1523_v3 = vor.u32 %v1535_v0, %v1522_v4  ;;  %1480 = vmatpush.bf16.msrb.mxu3 %v1527_v9  ;;  %s1497_s23 = sshll.u32 %s1577_s3, 4  ;;  %s1498_s23 = int_to_ptr.vmem [resolvable:$true] %s1497_s23 }
 0x227   :  { %v1019_v50 = vpop.f32.mrf.mxu3  ;;  %v1045_v55 = vpop.f32.mrf.mxu2 }
 0x228   :  { %v1020_v43 = vadd.f32 %v1019_v50, %v989_v63  ;;  %1467 = vmatpush.bf16.msrb.mxu2 %v1523_v3  ;;  %1438 = vmatpush.bf16.msra.mxu0 %v1523_v3 }
 0x22a   :  { %v1046_v8 = vadd.f32 %v1045_v55, %v1020_v43 }
 0x22f   :  { %v1070_v18 = vpop.f32.mrf.mxu3 }
 0x230   :  { %v1071_v33 = vadd.f32 %v1070_v18, %v1046_v8 }
 0x232   :  { %v1098_v24 = vadd.f32 %v1097_v58, %v1071_v33 }
 0x234   :  { %v1121_v23 = vadd.f32 %v1120_v30, %v1098_v24 }
 0x236   :  { %v1123_v51 = vsub.f32 0.0, %v1121_v23 }
 0x238   :  { %v1124_v27 = vmul.f32 1.442695, %v1123_v51 }
 0x23a   :  { %1541 = vpow2.f32 %v1124_v27 }
 0x240   :  { %v1542_v31 = vpop.eup %1541 }
 0x241   :  { %v1126_v38 = vadd.f32 1.0, %v1542_v31 }
 0x243   :  { %1543 = vrcp.f32 %v1126_v38  ;;  %v1138_v12 = vand.u32 2147483648, %v1126_v38  ;;  %vm1132_vm2 = vweird.f32 %v1126_v38  ;;  %v1136_v15 = vand.u32 2147483647, %v1126_v38 }
 0x245   :  { %v1139_v61 = vor.u32 1.1754944e-38, %v1138_v12  ;;  %vm1137_vm5 = vcmp.eq.f32.partialorder %v1136_v15, 8.507059e+37 }
 0x249   :  { %v1544_v54 = vpop.eup %1543 }
 0x24a   :  { %v1128_v56 = vmul.f32 %v1544_v54, %v1126_v38  ;;  %vm1133_vm3 = vweird.f32 %v1544_v54 }
 0x24b   :  { %vm1134_vm4 = vmor %vm1132_vm2, %vm1133_vm3 }
 0x24c   :  { %v1129_v42 = vsub.f32 1.0, %v1128_v56 }
 0x24e   :  { %v1130_v47 = vmul.f32 %v1544_v54, %v1129_v42 }
 0x250   :  { %v1131_v22 = vadd.f32 %v1544_v54, %v1130_v47 }
 0x252   :  { %v1135_v60 = vsel %vm1134_vm4, %v1544_v54, %v1131_v22 }
 0x253   :  { %v1140_v45 = vsel %vm1137_vm5, %v1139_v61, %v1135_v60 }
 0x254   :  { %v1340_v20 = vpack.c.bf16 %v1140_v45, %v1140_v45 }
 0x256   :  { %v1341_v2 = vunpack.c.l.bf16 %v1340_v20  ;;  %1518 = vmatmul.msk.bf16.vlgmr.msra.gmra.mxu2 %vm960_vm1, %v1340_v20  ;;  %1519 = vmatmul.msk.bf16.vlgmr.msra.gmra.mxu3 %vm960_vm1, %v1340_v20 }
 0x258   :  { %v1342_v29 = vsub.f32 %v1140_v45, %v1341_v2 }
 0x25a   :  { %v1343_v13 = vpack.c.bf16 %v1342_v29, %v1342_v29 }
 0x25c   :  { %1516 = vmatmul.msk.bf16.vlgmr.msrb.gmra.mxu0 %vm960_vm1, %v1343_v13  ;;  %1517 = vmatmul.msk.bf16.vlgmr.msrb.gmra.mxu1 %vm960_vm1, %v1343_v13 }
 0x294   :  { %v1241_v37 = vpop.f32.mrf.mxu0  ;;  %v1266_v53 = vpop.f32.mrf.mxu1 }
 0x298   :  { %v1184_v32 = vpop.f32.mrf.mxu2 }
 0x299   :  { %v1185_v46 = vadd.f32 %v1184_v32, %v1147_v48 }
 0x2a0   :  { %v1215_v40 = vpop.f32.mrf.mxu3  ;;  %v1293_v5 = vpop.f32.mrf.mxu2 }
 0x2a1   :  { %v1216_v6 = vadd.f32 %v1215_v40, %v1185_v46 }
 0x2a3   :  { %v1242_v17 = vadd.f32 %v1241_v37, %v1216_v6 }
 0x2a5   :  { %v1267_v1 = vadd.f32 %v1266_v53, %v1242_v17 }
 0x2a7   :  { %v1294_v10 = vadd.f32 %v1293_v5, %v1267_v1 }
 0x2a8   :  { %v1316_v26 = vpop.f32.mrf.mxu3 }
 0x2a9   :  { %v1317_v28 = vadd.f32 %v1316_v26, %v1294_v10 }
 0x2ab   :  { %v1319_v34 = vsub.f32 0.0, %v1317_v28 }
 0x2ad   :  { %v1320_v52 = vmul.f32 1.442695, %v1319_v34 }
 0x2af   :  { %1545 = vpow2.f32 %v1320_v52 }
 0x2b5   :  { %v1546_v35 = vpop.eup %1545 }
 0x2b6   :  { %v1322_v39 = vadd.f32 1.0, %v1546_v35 }
 0x2b8   :  { %1547 = vrcp.f32 %v1322_v39  ;;  %v1334_v41 = vand.u32 2147483648, %v1322_v39  ;;  %v1332_v57 = vand.u32 2147483647, %v1322_v39  ;;  %vm1328_vm7 = vweird.f32 %v1322_v39 }
 0x2ba   :  { %v1335_v55 = vor.u32 1.1754944e-38, %v1334_v41  ;;  %vm1333_vm9 = vcmp.eq.f32.partialorder %v1332_v57, 8.507059e+37 }
 0x2be   :  { %v1548_v36 = vpop.eup %1547 }
 0x2bf   :  { %v1324_v49 = vmul.f32 %v1548_v36, %v1322_v39  ;;  %vm1329_vm6 = vweird.f32 %v1548_v36 }
 0x2c0   :  { %vm1330_vm8 = vmor %vm1328_vm7, %vm1329_vm6 }
 0x2c1   :  { %v1325_v44 = vsub.f32 1.0, %v1324_v49 }
 0x2c3   :  { %v1326_v50 = vmul.f32 %v1548_v36, %v1325_v44 }
 0x2c5   :  { %v1327_v63 = vadd.f32 %v1548_v36, %v1326_v50 }
 0x2c7   :  { %v1331_v43 = vsel %vm1330_vm8, %v1548_v36, %v1327_v63 }
 0x2c8   :  { %v1336_v18 = vsel %vm1333_vm9, %v1335_v55, %v1331_v43 }
 0x2c9   :  { %v1414_v8 = vpack.c.bf16 %v1336_v18, %v1336_v18 }
 0x2cb   :  { %1530 = vmatmul.msk.bf16.vlgmr.msrb.gmra.mxu2 %vm960_vm1, %v1414_v8  ;;  %1531 = vmatmul.msk.bf16.vlgmr.msrb.gmra.mxu3 %vm960_vm1, %v1414_v8  ;;  %v1415_v58 = vunpack.c.l.bf16 %v1414_v8 }
 0x2cd   :  { %v1416_v33 = vsub.f32 %v1336_v18, %v1415_v58 }
 0x2cf   :  { %v1417_v30 = vpack.c.bf16 %v1416_v33, %v1416_v33 }
 0x2d1   :  { %1528 = vmatmul.msk.bf16.vlgmr.msra.gmra.mxu0 %vm960_vm1, %v1417_v30  ;;  %1529 = vmatmul.msk.bf16.vlgmr.msra.gmra.mxu1 %vm960_vm1, %v1417_v30 }
 0x2d9   :  { %v1366_v24 = vpop.f32.mrf.mxu0  ;;  %v1379_v23 = vpop.f32.mrf.mxu1 }
 0x2da   :  { %v1395_v51 = vpop.f32.mrf.mxu2  ;;  %v1408_v31 = vpop.f32.mrf.mxu3 }
 0x2db   :  { %v1396_v27 = vadd.f32 %v1395_v51, %v1366_v24  ;;  %v1409_v38 = vadd.f32 %v1408_v31, %v1379_v23 }
 0x2e1   :  { %v1368_v54 = vpop.f32.mrf.mxu0  ;;  %v1381_v56 = vpop.f32.mrf.mxu1 }
 0x2e2   :  { %v1397_v12 = vpop.f32.mrf.mxu2  ;;  %v1410_v42 = vpop.f32.mrf.mxu3 }
 0x34e   :  { %v1440_v47 = vpop.f32.mrf.mxu0  ;;  %v1453_v61 = vpop.f32.mrf.mxu1 }
 0x34f   :  { %v1469_v22 = vpop.f32.mrf.mxu2  ;;  %v1482_v15 = vpop.f32.mrf.mxu3 }
 0x350   :  { %v1470_v60 = vadd.f32 %v1469_v22, %v1440_v47  ;;  %v1483_v45 = vadd.f32 %v1482_v15, %v1453_v61 }
 0x352   :  { %v1486_v16 = vmul.f32 %v1470_v60, %v1396_v27  ;;  %v1487_v19 = vmul.f32 %v1483_v45, %v1409_v38 }
 0x354   :  { %v1488_v20 = vmul.f32 %v1486_v16, %v2381_v14  ;;  %v1489_v7 = vmul.f32 %v1487_v19, %v2101_v11 }
 0x356   :  { %1490 = vst [vmem:[#allocation2] sm:$0xff] %v1488_v20  ;;  %v1442_v59 = vpop.f32.mrf.mxu0  ;;  %v1455_v21 = vpop.f32.mrf.mxu1 }
 0x357   :  { %1491 = vst [vmem:[#allocation2 + $0x8] sm:$0xff] %v1489_v7  ;;  %v1471_v2 = vpop.f32.mrf.mxu2  ;;  %v1484_v29 = vpop.f32.mrf.mxu3 }
 0x358   :  { %1502 = dma.vmem_to_hbm [thread:$0]  %s1498_s23, 256, %s1500_s26, [#allocation3]  }
 0x359   :  { %1573 = dma.done.wait [#allocation3], 256  }
 0x35a   :  { %1574 = vsyncadd [#allocation3], 4294967040 }
 0x35b   :  { %1507 = vsyncpa [#allocation3], 1 }

</bundles_post_ra>
